<compile_context>
chip_gen: v7x
topology: tpu7x:2x2x1
jax: 0.10.0
libtpu: 0.0.40
codegen_flags: <defaults>
</compile_context>

<pallas_src>
import functools

import jax
import jax.numpy as jnp
import numpy as np
from jax import lax
from jax.experimental import pallas as pl
from jax.experimental.pallas import tpu as pltpu


def _context_block_kernel(x_ref, wb_ref, bm_ref, w1_ref, p1_ref, w2_ref, o_ref, *, eps):
    # x_ref / o_ref: (NB, C, HW)  NB batch elements, spatial flattened onto lanes.
    # wb_ref: (C, 2)   col 0 = conv_mask weight, col 1 = final 1x1-conv bias b2.
    # bm_ref: (1, 1)   conv_mask bias scalar (SMEM).
    # w1_ref: (mid, C) first 1x1 conv; p1_ref: (3, mid) rows = [b1, ln_gamma, ln_beta].
    # w2_ref: (C, mid) second 1x1 conv.
    xf = x_ref[...].astype(jnp.float32)                       # (NB, C, HW) upcast in-kernel

    # --- spatial attention pool: conv_mask -> softmax over HW -> weighted sum ---
    wm = wb_ref[:, 0:1]                                        # (C, 1)
    logits = jnp.sum(xf * wm, axis=1) + bm_ref[0, 0]           # (NB, HW)  sublane reduce
    m = jnp.max(logits, axis=-1, keepdims=True)                # (NB, 1)
    e = jnp.exp(logits - m)                                    # (NB, HW)  EUP
    denom = jnp.sum(e, axis=-1, keepdims=True)                 # (NB, 1)
    ctx = jnp.sum(xf * e[:, None, :], axis=-1)                 # (NB, C)   lane reduce
    ctx = ctx * (1.0 / denom)                                  # fold softmax norm (tiny)

    # --- channel_add bottleneck MLP, batched over the NB elements of this step ---
    t = lax.dot_general(ctx, w1_ref[...], (((1,), (1,)), ((), ())),
                        preferred_element_type=jnp.float32)    # (NB, mid)
    t = t + p1_ref[0:1, :]                                     # + b1
    mu = jnp.mean(t, axis=-1, keepdims=True)
    var = jnp.mean(jnp.square(t - mu), axis=-1, keepdims=True)
    t = (t - mu) * lax.rsqrt(var + eps) * p1_ref[1:2, :] + p1_ref[2:3, :]
    t = jnp.maximum(t, 0.0)
    t = lax.dot_general(t, w2_ref[...], (((1,), (1,)), ((), ())),
                        preferred_element_type=jnp.float32)    # (NB, C)

    # --- fuse: residual broadcast-add over the spatial (lane) axis ---
    t_add = t[:, :, None] + wb_ref[:, 1:2]                     # (NB, C, 1) + b2 (C, 1)
    o_ref[...] = (xf + t_add).astype(o_ref.dtype)


def _pick_nb(n, bytes_per_elem, *, max_block_bytes=4 << 20, min_steps=2):
    """Batch-elements-per-grid-step: big enough to amortise per-step overhead,
    small enough for VMEM, and keeping >= 2 steps (when possible) for v7x's 2 TCs."""
    nb_cap = max(1, int(max_block_bytes // max(int(bytes_per_elem), 1)))
    if n >= min_steps:
        nb_cap = min(nb_cap, n // min_steps)
    nb = max(1, min(n, nb_cap))
    while n % nb:          # avoid a ragged last block
        nb -= 1
    return nb


def context_block_2d(x, conv_mask_w, conv_mask_b, w1, b1, ln_g, ln_b, w2, b2,
                     *, eps=1e-5):
    """ContextBlock2d forward (pool='att', fusions=['channel_add']).

    x: (N, C, H, W).  conv_mask_w: (C,), conv_mask_b: (1,).
    w1: (mid, C), b1/ln_g/ln_b: (mid,), w2: (C, mid), b2: (C,).
    Returns (N, C, H, W) in x.dtype (PyTorch NCHW convention).
    """
    N, C, H, W = x.shape
    HW = H * W
    mid = w1.shape[0]
    out_dtype = x.dtype
    f32 = jnp.float32

    # Free view: keep NCHW, just flatten spatial onto the lane axis (native dtype).
    x2 = x.reshape(N, C, HW)

    # Collapse the tiny parameter streams into packed blocks.
    wb = jnp.stack([conv_mask_w.astype(f32), b2.astype(f32)], axis=1)        # (C, 2)
    p1 = jnp.stack([b1.astype(f32), ln_g.astype(f32), ln_b.astype(f32)], 0)  # (3, mid)
    bm = conv_mask_b.reshape(1, 1).astype(f32)                               # SMEM scalar
    w1f = w1.astype(f32)                                                     # (mid, C)
    w2f = w2.astype(f32)                                                     # (C, mid)

    nb = _pick_nb(N, C * HW * x2.dtype.itemsize)
    steps = N // nb

    kernel = functools.partial(_context_block_kernel, eps=eps)

    cost = pl.CostEstimate(
        flops=int(N * (5 * C * HW + 4 * mid * C + 5 * HW)),
        transcendentals=int(N * HW),
        bytes_accessed=int(2 * N * C * HW * x2.dtype.itemsize
                           + 4 * (2 * C * mid + 3 * mid + 2 * C + 1)),
    )

    out2 = pl.pallas_call(
        kernel,
        out_shape=jax.ShapeDtypeStruct((N, C, HW), out_dtype),
        grid_spec=pltpu.PrefetchScalarGridSpec(
            num_scalar_prefetch=0,
            grid=(steps,),
            in_specs=[
                pl.BlockSpec((nb, C, HW), lambda n: (n, 0, 0)),        # x (NB elems/step)
                pl.BlockSpec((C, 2), lambda n: (0, 0)),                # [conv_mask_w | b2]
                pl.BlockSpec(memory_space=pltpu.MemorySpace.SMEM),     # conv_mask bias
                pl.BlockSpec((mid, C), lambda n: (0, 0)),              # W1
                pl.BlockSpec((3, mid), lambda n: (0, 0)),              # [b1 | ln_g | ln_b]
                pl.BlockSpec((C, mid), lambda n: (0, 0)),              # W2
            ],
            out_specs=pl.BlockSpec((nb, C, HW), lambda n: (n, 0, 0)),
        ),
        compiler_params=pltpu.CompilerParams(
            dimension_semantics=("parallel",),
            vmem_limit_bytes=48 * 1024 * 1024),
        cost_estimate=cost,
        input_output_aliases={0: 0},   # residual add can be done in place when donated
    )(x2, wb, bm, w1f, p1, w2f)

    return out2.reshape(N, C, H, W)


def _reference(x, conv_mask_w, conv_mask_b, w1, b1, ln_g, ln_b, w2, b2, *, eps=1e-5):
    # pure-JAX reference mirroring the PyTorch forward (att pool + channel_add)
    N, C, H, W = x.shape
    HW = H * W
    xf = x.reshape(N, C, HW).astype(jnp.float32)
    logits = jnp.einsum('ncs,c->ns', xf, conv_mask_w) + conv_mask_b          # (N, HW)
    attn = jax.nn.softmax(logits, axis=-1)
    context = jnp.einsum('ncs,ns->nc', xf, attn)                             # (N, C)
    t = context @ w1.T + b1                                                  # (N, mid)
    mu = jnp.mean(t, axis=-1, keepdims=True)
    var = jnp.mean((t - mu) ** 2, axis=-1, keepdims=True)
    t = (t - mu) / jnp.sqrt(var + eps) * ln_g + ln_b
    t = jnp.maximum(t, 0.0)
    t = t @ w2.T + b2                                                        # (N, C)
    return (x.astype(jnp.float32) + t[:, :, None, None]).astype(x.dtype)


if __name__ == "__main__":
    # ContextBlock2d(inplanes=32, planes=32, pool='att', fusions=['channel_add'], ratio=8)
    N, C, H, W = 4, 32, 16, 16
    ratio = 8
    mid = C // ratio   # planes // ratio = 4

    key = jax.random.PRNGKey(0)
    ks = jax.random.split(key, 9)
    x = jax.random.normal(ks[0], (N, C, H, W), dtype=jnp.float32)
    conv_mask_w = jax.random.normal(ks[1], (C,), dtype=jnp.float32) * 0.1
    conv_mask_b = jax.random.normal(ks[2], (1,), dtype=jnp.float32) * 0.1
    w1 = jax.random.normal(ks[3], (mid, C), dtype=jnp.float32) * 0.1
    b1 = jax.random.normal(ks[4], (mid,), dtype=jnp.float32) * 0.1
    ln_g = jax.random.normal(ks[5], (mid,), dtype=jnp.float32) * 0.1 + 1.0
    ln_b = jax.random.normal(ks[6], (mid,), dtype=jnp.float32) * 0.1
    # NOTE: PyTorch's reset_parameters zero-inits the final conv (last_zero_init);
    # random weights are used here so the full data path is actually exercised.
    w2 = jax.random.normal(ks[7], (C, mid), dtype=jnp.float32) * 0.1
    b2 = jax.random.normal(ks[8], (C,), dtype=jnp.float32) * 0.1

    out = context_block_2d(x, conv_mask_w, conv_mask_b, w1, b1, ln_g, ln_b, w2, b2)
    out = jax.block_until_ready(out)

    ref = _reference(x, conv_mask_w, conv_mask_b, w1, b1, ln_g, ln_b, w2, b2)
    np.testing.assert_allclose(np.asarray(out), np.asarray(ref), rtol=1e-4, atol=1e-4)
    print("KERNEL_OK")
</pallas_src>

<mosaic_0001>
module attributes {stable_mosaic.version = 11 : i64} {
  func.func @_context_block_kernel(%arg0: i32, %arg1: memref<2x32x256xf32, #tpu.memory_space<vmem>>, %arg2: memref<32x2xf32, #tpu.memory_space<vmem>>, %arg3: memref<1x1xf32, #tpu.memory_space<smem>>, %arg4: memref<4x32xf32, #tpu.memory_space<vmem>>, %arg5: memref<3x4xf32, #tpu.memory_space<vmem>>, %arg6: memref<32x4xf32, #tpu.memory_space<vmem>>, %arg7: memref<2x32x256xf32, #tpu.memory_space<vmem>>) attributes {dimension_semantics = [#tpu.dimension_semantics<parallel>], iteration_bounds = array<i64: 2>, scalar_prefetch = 0 : i64, scratch_operands = 0 : i64, tpu.core_type = #tpu.core_type<tc>, window_params = [{transform_indices = @transform_0, window_bounds = array<i64: 2, 32, 256>}, {pipeline_mode = #tpu.pipeline_mode<synchronous>, transform_indices = @transform_1, window_bounds = array<i64: 32, 2>}, {transform_indices = @transform_2, window_bounds = array<i64: 1, 1>}, {pipeline_mode = #tpu.pipeline_mode<synchronous>, transform_indices = @transform_3, window_bounds = array<i64: 4, 32>}, {pipeline_mode = #tpu.pipeline_mode<synchronous>, transform_indices = @transform_4, window_bounds = array<i64: 3, 4>}, {pipeline_mode = #tpu.pipeline_mode<synchronous>, transform_indices = @transform_5, window_bounds = array<i64: 32, 4>}, {transform_indices = @transform_6, window_bounds = array<i64: 2, 32, 256>}]} {
    %c0 = arith.constant 0 : index
    %c0_0 = arith.constant 0 : index
    %c0_1 = arith.constant 0 : index
    %0 = vector.load %arg1[%c0, %c0_0, %c0_1] : memref<2x32x256xf32, #tpu.memory_space<vmem>>, vector<2x32x256xf32>
    %c0_2 = arith.constant 0 : index
    %c0_3 = arith.constant 0 : index
    %1 = vector.load %arg2[%c0_2, %c0_3] : memref<32x2xf32, #tpu.memory_space<vmem>>, vector<32x1xf32>
    %2 = vector.shape_cast %1 : vector<32x1xf32> to vector<1x32x1xf32>
    %3 = vector.broadcast %2 : vector<1x32x1xf32> to vector<2x32x256xf32>
    %4 = arith.mulf %0, %3 : vector<2x32x256xf32>
    %cst = arith.constant dense<0.000000e+00> : vector<2x256xf32>
    %5 = vector.multi_reduction <add>, %4, %cst [1] : vector<2x32x256xf32> to vector<2x256xf32>
    %c0_4 = arith.constant 0 : index
    %c0_5 = arith.constant 0 : index
    %6 = memref.load %arg3[%c0_4, %c0_5] : memref<1x1xf32, #tpu.memory_space<smem>>
    %7 = vector.broadcast %6 : f32 to vector<2x256xf32>
    %8 = arith.addf %5, %7 : vector<2x256xf32>
    %cst_6 = arith.constant dense<0xFF800000> : vector<2xf32>
    %9 = vector.multi_reduction <maximumf>, %8, %cst_6 [1] : vector<2x256xf32> to vector<2xf32>
    %10 = vector.shape_cast %9 : vector<2xf32> to vector<2x1xf32>
    %11 = vector.broadcast %10 : vector<2x1xf32> to vector<2x256xf32>
    %12 = arith.subf %8, %11 : vector<2x256xf32>
    %13 = math.exp %12 : vector<2x256xf32>
    %cst_7 = arith.constant dense<0.000000e+00> : vector<2xf32>
    %14 = vector.multi_reduction <add>, %13, %cst_7 [1] : vector<2x256xf32> to vector<2xf32>
    %15 = vector.shape_cast %14 : vector<2xf32> to vector<2x1xf32>
    %16 = vector.shape_cast %13 : vector<2x256xf32> to vector<2x1x256xf32>
    %17 = vector.broadcast %16 : vector<2x1x256xf32> to vector<2x32x256xf32>
    %18 = arith.mulf %0, %17 : vector<2x32x256xf32>
    %cst_8 = arith.constant dense<0.000000e+00> : vector<2x32xf32>
    %19 = vector.multi_reduction <add>, %18, %cst_8 [2] : vector<2x32x256xf32> to vector<2x32xf32>
    %cst_9 = arith.constant 1.000000e+00 : f32
    %20 = vector.broadcast %cst_9 : f32 to vector<2x1xf32>
    %21 = arith.divf %20, %15 : vector<2x1xf32>
    %22 = vector.broadcast %21 : vector<2x1xf32> to vector<2x32xf32>
    %23 = arith.mulf %19, %22 : vector<2x32xf32>
    %c0_10 = arith.constant 0 : index
    %c0_11 = arith.constant 0 : index
    %24 = vector.load %arg4[%c0_10, %c0_11] : memref<4x32xf32, #tpu.memory_space<vmem>>, vector<4x32xf32>
    %cst_12 = arith.constant dense<0.000000e+00> : vector<2x4xf32>
    %25 = tpu.matmul %23, %24, %cst_12 {dimension_numbers = #tpu.dot_dimension_numbers<[1], [1], [0], [0], [0, 0, 1, 0], [], []>} : vector<2x32xf32>, vector<4x32xf32>, vector<2x4xf32> -> vector<2x4xf32>
    %c0_13 = arith.constant 0 : index
    %c0_14 = arith.constant 0 : index
    %26 = vector.load %arg5[%c0_13, %c0_14] : memref<3x4xf32, #tpu.memory_space<vmem>>, vector<1x4xf32>
    %27 = vector.broadcast %26 : vector<1x4xf32> to vector<2x4xf32>
    %28 = arith.addf %25, %27 : vector<2x4xf32>
    %cst_15 = arith.constant dense<0.000000e+00> : vector<2xf32>
    %29 = vector.multi_reduction <add>, %28, %cst_15 [1] : vector<2x4xf32> to vector<2xf32>
    %30 = vector.shape_cast %29 : vector<2xf32> to vector<2x1xf32>
    %cst_16 = arith.constant 4.000000e+00 : f32
    %31 = vector.broadcast %cst_16 : f32 to vector<2x1xf32>
    %32 = arith.divf %30, %31 : vector<2x1xf32>
    %33 = vector.broadcast %32 : vector<2x1xf32> to vector<2x4xf32>
    %34 = arith.subf %28, %33 : vector<2x4xf32>
    %35 = arith.mulf %34, %34 : vector<2x4xf32>
    %cst_17 = arith.constant dense<0.000000e+00> : vector<2xf32>
    %36 = vector.multi_reduction <add>, %35, %cst_17 [1] : vector<2x4xf32> to vector<2xf32>
    %37 = vector.shape_cast %36 : vector<2xf32> to vector<2x1xf32>
    %cst_18 = arith.constant 4.000000e+00 : f32
    %38 = vector.broadcast %cst_18 : f32 to vector<2x1xf32>
    %39 = arith.divf %37, %38 : vector<2x1xf32>
    %40 = vector.broadcast %32 : vector<2x1xf32> to vector<2x4xf32>
    %41 = arith.subf %28, %40 : vector<2x4xf32>
    %cst_19 = arith.constant 9.99999974E-6 : f32
    %42 = vector.broadcast %cst_19 : f32 to vector<2x1xf32>
    %43 = arith.addf %39, %42 : vector<2x1xf32>
    %44 = math.rsqrt %43 : vector<2x1xf32>
    %45 = vector.broadcast %44 : vector<2x1xf32> to vector<2x4xf32>
    %46 = arith.mulf %41, %45 : vector<2x4xf32>
    %c1 = arith.constant 1 : index
    %c0_20 = arith.constant 0 : index
    %47 = vector.load %arg5[%c1, %c0_20] : memref<3x4xf32, #tpu.memory_space<vmem>>, vector<1x4xf32>
    %48 = vector.broadcast %47 : vector<1x4xf32> to vector<2x4xf32>
    %49 = arith.mulf %46, %48 : vector<2x4xf32>
    %c2 = arith.constant 2 : index
    %c0_21 = arith.constant 0 : index
    %50 = vector.load %arg5[%c2, %c0_21] : memref<3x4xf32, #tpu.memory_space<vmem>>, vector<1x4xf32>
    %51 = vector.broadcast %50 : vector<1x4xf32> to vector<2x4xf32>
    %52 = arith.addf %49, %51 : vector<2x4xf32>
    %cst_22 = arith.constant 0.000000e+00 : f32
    %53 = vector.broadcast %cst_22 : f32 to vector<2x4xf32>
    %54 = arith.maximumf %52, %53 : vector<2x4xf32>
    %c0_23 = arith.constant 0 : index
    %c0_24 = arith.constant 0 : index
    %55 = vector.load %arg6[%c0_23, %c0_24] : memref<32x4xf32, #tpu.memory_space<vmem>>, vector<32x4xf32>
    %cst_25 = arith.constant dense<0.000000e+00> : vector<2x32xf32>
    %56 = tpu.matmul %54, %55, %cst_25 {dimension_numbers = #tpu.dot_dimension_numbers<[1], [1], [0], [0], [0, 0, 1, 0], [], []>} : vector<2x4xf32>, vector<32x4xf32>, vector<2x32xf32> -> vector<2x32xf32>
    %57 = vector.shape_cast %56 : vector<2x32xf32> to vector<2x32x1xf32>
    %c0_26 = arith.constant 0 : index
    %c1_27 = arith.constant 1 : index
    %58 = vector.load %arg2[%c0_26, %c1_27] : memref<32x2xf32, #tpu.memory_space<vmem>>, vector<32x1xf32>
    %59 = vector.shape_cast %58 : vector<32x1xf32> to vector<1x32x1xf32>
    %60 = vector.broadcast %59 : vector<1x32x1xf32> to vector<2x32x1xf32>
    %61 = arith.addf %57, %60 : vector<2x32x1xf32>
    %62 = vector.broadcast %61 : vector<2x32x1xf32> to vector<2x32x256xf32>
    %63 = arith.addf %0, %62 : vector<2x32x256xf32>
    %c0_28 = arith.constant 0 : index
    %c0_29 = arith.constant 0 : index
    %c0_30 = arith.constant 0 : index
    %64 = vector.load %arg7[%c0_28, %c0_29, %c0_30] : memref<2x32x256xf32, #tpu.memory_space<vmem>>, vector<2x32x256xf32>
    tpu.vector_store %arg7[%c0_28, %c0_29, %c0_30], %63 {strides = array<i32>} : memref<2x32x256xf32, #tpu.memory_space<vmem>>, vector<2x32x256xf32>,
    return
  }
  func.func @transform_0(%arg0: i32) -> (i32, i32, i32) {
    %c0_i32 = arith.constant 0 : i32
    %c0_i32_0 = arith.constant 0 : i32
    %c0_i32_1 = arith.constant 0 : i32
    return %arg0, %c0_i32, %c0_i32_0 : i32, i32, i32
  }
  func.func @transform_1(%arg0: i32) -> (i32, i32) {
    %c0_i32 = arith.constant 0 : i32
    %c0_i32_0 = arith.constant 0 : i32
    %c0_i32_1 = arith.constant 0 : i32
    return %c0_i32, %c0_i32_0 : i32, i32
  }
  func.func @transform_2(%arg0: i32) -> (i32, i32) {
    %c0_i32 = arith.constant 0 : i32
    %c0_i32_0 = arith.constant 0 : i32
    %c0_i32_1 = arith.constant 0 : i32
    return %c0_i32, %c0_i32_0 : i32, i32
  }
  func.func @transform_3(%arg0: i32) -> (i32, i32) {
    %c0_i32 = arith.constant 0 : i32
    %c0_i32_0 = arith.constant 0 : i32
    %c0_i32_1 = arith.constant 0 : i32
    return %c0_i32, %c0_i32_0 : i32, i32
  }
  func.func @transform_4(%arg0: i32) -> (i32, i32) {
    %c0_i32 = arith.constant 0 : i32
    %c0_i32_0 = arith.constant 0 : i32
    %c0_i32_1 = arith.constant 0 : i32
    return %c0_i32, %c0_i32_0 : i32, i32
  }
  func.func @transform_5(%arg0: i32) -> (i32, i32) {
    %c0_i32 = arith.constant 0 : i32
    %c0_i32_0 = arith.constant 0 : i32
    %c0_i32_1 = arith.constant 0 : i32
    return %c0_i32, %c0_i32_0 : i32, i32
  }
  func.func @transform_6(%arg0: i32) -> (i32, i32, i32) {
    %c0_i32 = arith.constant 0 : i32
    %c0_i32_0 = arith.constant 0 : i32
    %c0_i32_1 = arith.constant 0 : i32
    return %arg0, %c0_i32, %c0_i32_0 : i32, i32, i32
  }
}

</mosaic_0001>

<bundles_post_ra>
// kernel: tpu_custom_call.1
= control target key start
LH: loop header
LB: loop body
LE: loop exit
PB: predicated region body
PF: predicated region fallthrough
CT: control target
= control target key end

     0   :  { %s1634_s0 = inlined_call_operand.hbm [shape: f32[4,32,256], index: 0, kind: input, shape index: {}, may-alias: {0,6}]   ;;  %s1635_s1 = inlined_call_operand.vmem [shape: f32[32,2], index: 1, kind: input, shape index: {}]   ;;  %s1636_s2 = inlined_call_operand.<no memory space> [shape: f32[1,1], index: 2, kind: input, shape index: {}]   ;;  %s1637_s3 = inlined_call_operand.vmem [shape: f32[4,32], index: 3, kind: input, shape index: {}]   ;;  %s1638_s4 = inlined_call_operand.vmem [shape: f32[3,4], index: 4, kind: input, shape index: {}]   ;;  %s1639_s5 = inlined_call_operand.vmem [shape: f32[32,4], index: 5, kind: input, shape index: {}]   ;;  %s1640_s6 = inlined_call_operand.hbm [shape: f32[4,32,256], index: 6, kind: output, shape index: {}, may-alias: {0,6}]  }
   0x1   :  { %11 = sst [smem:[#allocation2]] %s1636_s2 }
   0x2   :  { %12 = vsyncpa [#allocation4], 0 }
   0x3   :  { %14 = vsyncpa [#allocation4 + $0x1], 0 }
   0x4   :  { %15 = vsyncpa [#allocation5], 0 }
   0x5   :  { %17 = vsyncpa [#allocation5 + $0x1], 0  ;;  %s1259_s23 = smov 0   ;;  %s1261_s24 = smov 0  }
   0x6   :  { %s1263_s25 = smov 0   ;;  %s1265_s26 = smov 0  }
   0x7 LB: > { %s1280_s2 = sadd.s32 4294967295, %s1208_s26   ;;  %s980_s27 = sadd.s32 4294967294, %s1208_s26   ;;  %s1208_s26 = sphi %s1265_s26, %s1653_s26   ;;  %s1204_s25 = sphi %s1263_s25, %s1652_s25   ;;  %s1200_s24 = sphi %s1261_s24, %s1651_s24   ;;  %s1196_s23 = sphi %s1259_s23, %s1650_s23  }
   0x8   : > { %s1284_s28 = sadd.s32 1, %s1208_s26   ;;  %s30_s29 = sadd.s32 1, %s1204_s25 }
   0x9   : > { %s27_s30 = ssub.s32 %s1208_s26, %s1284_s28  ;;  %p37_p0 = scmp.ne.s32.totalorder %s1204_s25, %s1200_s24 }
   0xa   : > { %p28_p1 = scmp.eq.s32.totalorder %s27_s30, 0  ;;  %p38_p2 = scmp.eq.s32.totalorder %s1208_s26, 0 }
   0xb   : > { %p43_p3 = scmp.ne.s32.totalorder %s1200_s24, %s1196_s23  ;;  %p44_p4 = scmp.eq.s32.totalorder %s1280_s2, 0 }
   0xc   : > { %s1296_s7 = scalar_select %p28_p1, %s1204_s25, %s30_s29  }
   0xd   : > { %p1298_p5 = por %p38_p2, %p37_p0  ;;  %p1302_p6 = por %p44_p4, %p43_p3 }
   0xe   : > { %p172_p7 = scmp.eq.s32.totalorder %s1280_s2, 1  ;;  %p178_p8 = scmp.eq.s32.totalorder %s980_s27, 1 }
   0xf   : > { %p1053_p10 = scmp.lt.s32.totalorder %s1208_s26, 2  ;;  %s213_s12 = sand.u32 1, %s1204_s25  }
  0x10   : > { %p1309_p11 = por %p172_p7, %p37_p0  ;;  %p1313_p12 = por %p178_p8, %p43_p3 }
  0x11   : > { %s1007_s13 = sshll.u32 %s1208_s26, 11  ;;  %s983_s14 = sshll.u32 %s213_s12, 7 }
  0x12   : > { %s1644_s10 = scalar_select %p1309_p11, 1, 0 }
  0x13   : > { %s1645_s11 = scalar_select %p1313_p12, 1, 0 }
  0x14   : > { %s1322_s17 = scalar_lea.hbm %s1634_s0, %s1007_s13  ;;  %s217_s18 = scalar_lea.vmem [#allocation3], %s983_s14 }
  0x15   : > { %s225_s19 = sshll.u32 %s217_s18, 4  ;;  %p1326_p13 = pnand %p1053_p10, %p1298_p5  ;;  %s1330_s19 = int_to_ptr.vmem [resolvable:$true] %s225_s19 }
  0x16   : > { %s1332_s21 = scalar_lea.sflag [#allocation4], %s213_s12  ;;  %s1112_s22 = scalar_lea.hbm %s1322_s17, 2048 }
  0x17   : > { %p1113_p0 = scmp.ne.s32.totalorder %s1322_s17, %s1112_s22  ;;  %p1114_p1 = pneg %p1326_p13 }
  0x18   : > { %s1117_s30 = scalar_lea.hbm %s1634_s0, 4096  ;;  %p1118_p4 = scmp.lt.u32.totalorder %s1322_s17, %s1634_s0 }
  0x19   : > { %p1115_p2 = pnand %p1114_p1, %p1113_p0  ;;  %p1119_p5 = scmp.lt.u32.totalorder %s1117_s30, %s1112_s22 }
  0x1a   : > { %p1121_p8 = scmp.lt.u32.totalorder %s1112_s22, %s1322_s17 }
  0x1b   : > { %p1116_p3 = pneg %p1115_p2  ;;  %p1120_p7 = por %p1119_p5, %p1118_p4 }
  0x1d   : > { %p1122_p10 = por %p1121_p8, %p1120_p7 }
  0x1f   : > { %p1123_p9 = pnand %p1122_p10, %p1116_p3 }
  0x21   : > { %1126 = shalt.err (!%p1123_p9)
}
  0x22   : > { %s1127_s12 = scalar_lea.vmem %s1330_s19, 2048  ;;  %s1210_s14 = smov [#allocation3]  }
  0x23   : > { %p1128_p0 = scmp.ne.s32.totalorder %s1330_s19, %s1127_s12  ;;  %s1132_s15 = sshll.u32 %s1210_s14, 4  ;;  %s1133_s15 = int_to_ptr.vmem [resolvable:$false] %s1132_s15 }
  0x24   : > { %s1134_s16 = scalar_lea.vmem %s1133_s15, 4096  ;;  %p1135_p11 = scmp.lt.s32.totalorder %s1330_s19, %s1133_s15 }
  0x25   : > { %p1130_p2 = pnand %p1128_p0, %p1114_p1  ;;  %p1136_p4 = scmp.lt.s32.totalorder %s1134_s16, %s1127_s12 }
  0x27   : > { %p1131_p12 = pneg %p1130_p2  ;;  %p1137_p5 = por %p1136_p4, %p1135_p11 }
  0x29   : > { %p1138_p7 = pnand %p1137_p5, %p1131_p12 }
  0x2b   : > { %1141 = shalt.err (!%p1138_p7)
}
  0x2c   : > { %s1211_s18 = smov 256   ;;  %s1212_s22 = smov 16  }
  0x2d   : > { %1048 = dma.hbm_to_vmem [thread:$0]  (!%p1326_p13), %s1322_s17, 2048, %s1330_s19, %s1332_s21, %s1211_s18, %s1211_s18, %s1212_s22  }
  0x2e   : > { %p987_p9 = scmp.ge.s32.totalorder %s1208_s26, 1  ;;  %p233_p1 = scmp.lt.s32.totalorder %s1208_s26, 3 }
  0x30   : > { %p234_p3 = pnand %p987_p9, %p233_p1 }
  0x31   : > { %s1363_s27 = sand.u32 (!%p234_p3), 1, %s1200_s24  }
  0x32   : > { %237 = sbr.rel (%p234_p3) target bundleno = 1707 (0x6ab), region = 44  ;;  %s988_s29 = sshll.u32 (!%p234_p3), %s1363_s27, 7 }
  0x33   : > { %s240_s30 = scalar_lea.sflag (!%p234_p3), [#allocation4], %s1363_s27  ;;  %s1369_s8 = scalar_lea.vmem (!%p234_p3), [#allocation3], %s988_s29 }
  0x39   : > { %1187 = dma.done.wait (%p1302_p6), %s240_s30, 2048  }
  0x3a   : > { %1189 = vsyncadd (%p1302_p6), %s240_s30, 4294965248  ;;  %v1213_v0 = vmov 0   ;;  %v1378_v1 = vld [vmem:[%s1635_s1 + $0x10] sm:$0xff]  ;;  %v1383_v2 = vld [vmem:[%s1635_s1] sm:$0xff]  ;;  %s366_s15 = sld [smem:[#allocation2]]  ;;  %vm376_vm0 = vcmask 1041409  }
  0x3b   : > { %1097 = vset.pattern.permute.xlu1 %v1213_v0  ;;  %1096 = vset.pattern.permute.xlu0 %v1213_v0  ;;  %v1390_v3 = vld [vmem:[%s1635_s1 + $0x18] sm:$0xff]  ;;  %v1395_v4 = vld [vmem:[%s1635_s1 + $0x8] sm:$0xff]  ;;  %v1400_v7 = vld [vmem:[%s1369_s8] sm:$0xff]  ;;  %vm381_vm1 = vcmask 1041408   ;;  %vm580_vm2 = vcmask 261120   ;;  %vm1215_vm3 = vmmov 0  }
  0x3c   : > { %306 = vperm.xlu1 %1097, %v1378_v1   ;;  %296 = vperm.xlu0 %1096, %v1383_v2   ;;  %v1403_v8 = vld [vmem:[%s1369_s8 + $0x8] sm:$0xff]  ;;  %v1406_v9 = vld [vmem:[%s1369_s8 + $0x20] sm:$0xff]  ;;  %v1415_v12 = vld [vmem:[%s1369_s8 + $0x10] sm:$0xff]  ;;  %vm544_vm4 = vcmask 130112   ;;  %vm551_vm5 = vcmask 195712   ;;  %vm558_vm6 = vcmask 261312  }
  0x3d   : > { %v1409_v10 = vld [vmem:[%s1369_s8 + $0x40] sm:$0xff]  ;;  %v1412_v11 = vld [vmem:[%s1369_s8 + $0x48] sm:$0xff]  ;;  %v1418_v13 = vld [vmem:[%s1369_s8 + $0x18] sm:$0xff]  ;;  %vm656_vm7 = vcmask 25600   ;;  %vm688_vm8 = vcmask 31744   ;;  %s1553_s22 = scalar_lea.vmem [#allocation6], %s988_s29 }
  0x3e   : > { %v1421_v14 = vld [vmem:[%s1369_s8 + $0x50] sm:$0xff]  ;;  %v1424_v15 = vld [vmem:[%s1369_s8 + $0x58] sm:$0xff]  ;;  %v1427_v16 = vld [vmem:[%s1369_s8 + $0x28] sm:$0xff]  ;;  %s1009_s29 = sshll.u32 %s1280_s2, 11  ;;  %s907_s30 = sshll.u32 %s1553_s22, 4  ;;  %s1582_s30 = int_to_ptr.vmem [resolvable:$true] %s907_s30 }
  0x3f   : > { %v1430_v17 = vld [vmem:[%s1369_s8 + $0x60] sm:$0xff]  ;;  %v1433_v18 = vld [vmem:[%s1369_s8 + $0x68] sm:$0xff]  ;;  %v1440_v24 = vld [vmem:[%s1369_s8 + $0x30] sm:$0xff]  ;;  %s1580_s19 = scalar_lea.hbm %s1640_s6, %s1009_s29  ;;  %s893_s2 = scalar_lea.sflag [#allocation5], %s1363_s27 }
  0x40   : > { %311 = vperm.xlu1 %1097, %v1390_v3   ;;  %301 = vperm.xlu0 %1096, %v1395_v4   ;;  %v1443_v26 = vld [vmem:[%s1369_s8 + $0x38] sm:$0xff]  ;;  %v1446_v27 = vld [vmem:[%s1369_s8 + $0x70] sm:$0xff]  ;;  %vm1035_vm9 = vmpackc.low %vm688_vm8, %vm688_vm8  ;;  %s1142_s20 = scalar_lea.vmem %s1582_s30, 2048  ;;  %p1647_p11 = scmp.ne.s32.totalorder %s1644_s10, 0 }
  0x41   : > { %v1449_v28 = vld [vmem:[%s1369_s8 + $0x78] sm:$0xff]  ;;  %p1143_p6 = scmp.ne.s32.totalorder %s1582_s30, %s1142_s20  ;;  %s1218_s21 = smov [#allocation6]  }
  0x42   : > { %s1146_s9 = sshll.u32 %s1218_s21, 4  ;;  %s1147_s9 = int_to_ptr.vmem [resolvable:$false] %s1146_s9 }
  0x43   : > { %p1144_p12 = pnand %p1143_p6, %p1647_p11  ;;  %s1148_s13 = scalar_lea.vmem %s1147_s9, 4096 }
  0x44   : > { %p1149_p8 = scmp.lt.s32.totalorder %s1582_s30, %s1147_s9  ;;  %p1150_p10 = scmp.lt.s32.totalorder %s1148_s13, %s1142_s20 }
  0x45   : > { %p1145_p13 = pneg %p1144_p12 }
  0x46   : > { %p1151_p0 = por %p1150_p10, %p1149_p8 }
  0x48   : > { %p1152_p2 = pnand %p1151_p0, %p1145_p13 }
  0xbb   : > { %v307_v5 = vpop.permute.xlu1 %306  ;;  %v297_v6 = vpop.permute.xlu0 %296 }
  0xbc   : > { %v314_v20 = vmul.f32 %v297_v6, %v1400_v7  ;;  %v315_v21 = vmul.f32 %v297_v6, %v1403_v8  ;;  %v322_v22 = vmul.f32 %v297_v6, %v1409_v10  ;;  %v323_v23 = vmul.f32 %v297_v6, %v1412_v11 }
  0xbd   : > { %v318_v33 = vmul.f32 %v307_v5, %v1406_v9  ;;  %v319_v34 = vmul.f32 %v307_v5, %v1427_v16  ;;  %v326_v35 = vmul.f32 %v307_v5, %v1430_v17  ;;  %v327_v36 = vmul.f32 %v307_v5, %v1433_v18 }
  0xbf   : > { %v302_v19 = vpop.permute.xlu0 %301  ;;  %v312_v25 = vpop.permute.xlu1 %311 }
  0xc0   : > { %v316_v29 = vmul.f32 %v302_v19, %v1415_v12  ;;  %v317_v30 = vmul.f32 %v302_v19, %v1418_v13  ;;  %v324_v31 = vmul.f32 %v302_v19, %v1421_v14  ;;  %v325_v32 = vmul.f32 %v302_v19, %v1424_v15 }
  0xc1   : > { %v320_v41 = vmul.f32 %v312_v25, %v1440_v24  ;;  %v321_v42 = vmul.f32 %v312_v25, %v1443_v26  ;;  %v328_v43 = vmul.f32 %v312_v25, %v1446_v27  ;;  %v329_v44 = vmul.f32 %v312_v25, %v1449_v28 }
  0xc2   : > { %v330_v37 = vadd.f32 %v316_v29, %v314_v20  ;;  %v339_v38 = vadd.f32 %v317_v30, %v315_v21  ;;  %v348_v39 = vadd.f32 %v324_v31, %v322_v22  ;;  %v357_v40 = vadd.f32 %v325_v32, %v323_v23 }
  0xc3   : > { %v367_v29 = vstv %s366_s15 }
  0xc4   : > { %v331_v45 = vadd.f32 %v330_v37, %v318_v33  ;;  %v340_v46 = vadd.f32 %v339_v38, %v319_v34  ;;  %v349_v47 = vadd.f32 %v348_v39, %v326_v35  ;;  %v358_v48 = vadd.f32 %v357_v40, %v327_v36 }
  0xc6   : > { %v332_v49 = vadd.f32 %v331_v45, %v320_v41  ;;  %v341_v50 = vadd.f32 %v340_v46, %v321_v42  ;;  %v350_v51 = vadd.f32 %v349_v47, %v328_v43  ;;  %v359_v52 = vadd.f32 %v358_v48, %v329_v44 }
  0xc8   : > { %v333_v53 = vrot.slane %v332_v49, 4  ;;  %v342_v54 = vrot.slane %v341_v50, 4  ;;  %v351_v55 = vrot.slane %v350_v51, 4  ;;  %v360_v56 = vrot.slane %v359_v52, 4 }
  0xca   : > { %v334_v57 = vadd.f32 %v333_v53, %v332_v49  ;;  %v343_v58 = vadd.f32 %v342_v54, %v341_v50  ;;  %v352_v59 = vadd.f32 %v351_v55, %v350_v51  ;;  %v361_v60 = vadd.f32 %v360_v56, %v359_v52 }
  0xcb   : > { %v418_v51 = vlaneseq }
  0xcc   : > { %v335_v61 = vrot.slane %v334_v57, 2  ;;  %v344_v62 = vrot.slane %v343_v58, 2  ;;  %v353_v63 = vrot.slane %v352_v59, 2  ;;  %v362_v0 = vrot.slane %v361_v60, 2 }
  0xcd   : > { %v1468_v54 = vshrl.u32 %v418_v51, 7 }
  0xce   : > { %v336_v5 = vadd.f32 %v335_v61, %v334_v57  ;;  %v345_v6 = vadd.f32 %v344_v62, %v343_v58  ;;  %v354_v19 = vadd.f32 %v353_v63, %v352_v59  ;;  %v363_v20 = vadd.f32 %v362_v0, %v361_v60 }
  0xcf   : > { %v1471_v55 = vsub.s32 0, %v1468_v54 }
  0xd0   : > { %v337_v21 = vrot.slane %v336_v5, 1  ;;  %v346_v22 = vrot.slane %v345_v6, 1  ;;  %v355_v23 = vrot.slane %v354_v19, 1  ;;  %v364_v25 = vrot.slane %v363_v20, 1 }
  0xd2   : > { %v338_v30 = vadd.f32 %v337_v21, %v336_v5  ;;  %v347_v31 = vadd.f32 %v346_v22, %v345_v6  ;;  %v356_v32 = vadd.f32 %v355_v23, %v354_v19  ;;  %v365_v33 = vadd.f32 %v364_v25, %v363_v20 }
  0xd4   : > { %v368_v34 = vadd.f32 %v367_v29, %v338_v30  ;;  %v369_v35 = vadd.f32 %v367_v29, %v347_v31  ;;  %v370_v36 = vadd.f32 %v367_v29, %v356_v32  ;;  %v371_v37 = vadd.f32 %v367_v29, %v365_v33 }
  0xd6   : > { %v377_v38 = vsel %vm376_vm0, %v370_v36, %v368_v34  ;;  %v378_v39 = vsel %vm376_vm0, %v371_v37, %v369_v35 }
  0xd7   : > { %v382_v40 = vsel %vm381_vm1, %v377_v38, -inf  ;;  %v383_v41 = vsel %vm381_vm1, %v378_v39, -inf }
  0xd8   : > { %v384_v42 = vmax.f32 %v382_v40, %v383_v41 }
  0xda   : > { %385 = vmax.xlane.f32.xlu0 %v384_v42 }
 0x167   : > { %v386_v43 = vpop.xlane.xlu0 %385 }
 0x168   : > { %v388_v44 = vrot.slane %v386_v43, 1  ;;  %v391_v45 = vsub.f32 %v368_v34, %v386_v43  ;;  %v392_v46 = vsub.f32 %v369_v35, %v386_v43 }
 0x16a   : > { %v393_v47 = vsub.f32 %v370_v36, %v388_v44  ;;  %v394_v48 = vsub.f32 %v371_v37, %v388_v44  ;;  %v395_v49 = vmul.f32 1.442695, %v391_v45  ;;  %v397_v50 = vmul.f32 1.442695, %v392_v46 }
 0x16c   : > { %1100 = vpow2.f32 %v395_v49  ;;  %v399_v52 = vmul.f32 1.442695, %v393_v47  ;;  %v401_v53 = vmul.f32 1.442695, %v394_v48 }
 0x16d   : > { %1102 = vpow2.f32 %v397_v50 }
 0x16e   : > { %1104 = vpow2.f32 %v399_v52 }
 0x16f   : > { %1106 = vpow2.f32 %v401_v53 }
 0x176   : > { %v1101_v56 = vpop.eup %1100 }
 0x177   : > { %v1103_v57 = vpop.eup %1102  ;;  %v421_v58 = vrot.slane %v1101_v56, %v1471_v55 }
 0x178   : > { %v1105_v59 = vpop.eup %1104  ;;  %v425_v60 = vrot.slane %v1103_v57, %v1471_v55 }
 0x179   : > { %v1107_v61 = vpop.eup %1106  ;;  %v434_v62 = vmul.f32 %v421_v58, %v1400_v7  ;;  %v407_v63 = vrot.slane %v1105_v59, 7  ;;  %v436_v19 = vmul.f32 %v421_v58, %v1415_v12  ;;  %v429_v21 = vrot.slane %v1105_v59, %v1471_v55 }
 0x17a   : > { %v435_v0 = vmul.f32 %v425_v60, %v1403_v8  ;;  %v409_v5 = vrot.slane %v1107_v61, 7  ;;  %v437_v20 = vmul.f32 %v425_v60, %v1418_v13  ;;  %v433_v29 = vrot.slane %v1107_v61, %v1471_v55 }
 0x17b   : > { %v408_v6 = vsel %vm376_vm0, %v407_v63, %v1101_v56  ;;  %v438_v32 = vmul.f32 %v421_v58, %v1406_v9  ;;  %v439_v33 = vmul.f32 %v425_v60, %v1427_v16  ;;  %v444_v35 = vmul.f32 %v429_v21, %v1421_v14 }
 0x17c   : > { %v450_v22 = vadd.f32 %v435_v0, %v434_v62  ;;  %v410_v23 = vsel %vm376_vm0, %v409_v5, %v1103_v57  ;;  %v413_v25 = vsel %vm381_vm1, %v408_v6, 0.0  ;;  %v453_v34 = vadd.f32 %v437_v20, %v436_v19 }
 0x17d   : > { %v414_v30 = vsel %vm381_vm1, %v410_v23, 0.0  ;;  %v445_v36 = vmul.f32 %v433_v29, %v1424_v15  ;;  %v456_v37 = vadd.f32 %v439_v33, %v438_v32  ;;  %v442_v38 = vmul.f32 %v429_v21, %v1409_v10 }
 0x17e   : > { %451 = vadd.xlane.f32.xlu0 %v450_v22  ;;  %v415_v31 = vadd.f32 %v414_v30, %v413_v25  ;;  %v443_v39 = vmul.f32 %v433_v29, %v1412_v11  ;;  %v446_v41 = vmul.f32 %v429_v21, %v1430_v17  ;;  %v447_v42 = vmul.f32 %v433_v29, %v1433_v18 }
 0x17f   : > { %v465_v40 = vadd.f32 %v445_v36, %v444_v35  ;;  %v440_v44 = vmul.f32 %v421_v58, %v1440_v24  ;;  %v441_v45 = vmul.f32 %v425_v60, %v1443_v26  ;;  %v448_v47 = vmul.f32 %v429_v21, %v1446_v27 }
 0x180   : > { %416 = vadd.xlane.f32.xlu1 %v415_v31  ;;  %v462_v43 = vadd.f32 %v443_v39, %v442_v38  ;;  %v468_v46 = vadd.f32 %v447_v42, %v446_v41  ;;  %v449_v48 = vmul.f32 %v433_v29, %v1449_v28  ;;  %v483_v58 = vsub.s32 1, %v1468_v54  ;;  %v495_v31 = vld [vmem:[%s1637_s3] sm:$0xf] }
 0x181   : > { %v459_v49 = vadd.f32 %v441_v45, %v440_v44  ;;  %v1214_v32 = vmov 0.0   ;;  %v534_v35 = vand.u32 127, %v418_v51 }
 0x182   : > { %454 = vadd.xlane.f32.xlu0 %v453_v34  ;;  %v471_v50 = vadd.f32 %v449_v48, %v448_v47  ;;  %1017 = vmatprep.subr.mxu0 %v1214_v32 }
 0x183   : > { %1019 = vmatprep.mubr.msk.f32.mxu0 %vm1215_vm3, %v1214_v32  ;;  %1018 = vmatpush3.xpose.msk.msra.mxu0 %vm580_vm2, %v495_v31  ;;  %v546_v38 = vadd.s32 4294967280, %v534_v35 }
 0x184   : > { %457 = vadd.xlane.f32.xlu1 %v456_v37  ;;  %1030 = vmatprep.mubr.msk.f32.mxu1 %vm1215_vm3, %v1214_v32  ;;  %v539_v37 = vadd.s32 4294967288, %v534_v35 }
 0x185   : > { %v549_v44 = vsub.s32 %v546_v38, %v1468_v54  ;;  %v687_v38 = vld [vmem:[%s1639_s5 + $0x18] sm:$0xff] }
 0x186   : > { %466 = vadd.xlane.f32.xlu0 %v465_v40  ;;  %v553_v40 = vadd.s32 4294967272, %v534_v35  ;;  %v542_v42 = vsub.s32 %v539_v37, %v1468_v54  ;;  %v686_v37 = vld [vmem:[%s1639_s5 + $0x10] sm:$0xff] }
 0x188   : > { %463 = vadd.xlane.f32.xlu1 %v462_v43  ;;  %v537_v43 = vsub.s32 %v534_v35, %v1468_v54  ;;  %v556_v45 = vsub.s32 %v553_v40, %v1468_v54  ;;  %v1216_v35 = vmov 0.0|0.0  }
 0x189   : > { %1033 = vmatprep.subr.bf16.mxu1 %v1216_v35 }
 0x18a   : > { %469 = vadd.xlane.f32.xlu0 %v468_v46 }
 0x18c   : > { %460 = vadd.xlane.f32.xlu1 %v459_v49 }
 0x18e   : > { %472 = vadd.xlane.f32.xlu0 %v471_v50 }
 0x20b   : > { %v452_v53 = vpop.xlane.xlu0 %451 }
 0x20d   : > { %v417_v52 = vpop.xlane.xlu1 %416 }
 0x20e   : > { %1108 = vrcp.f32 %v417_v52 }
 0x20f   : > { %v455_v57 = vpop.xlane.xlu0 %454 }
 0x211   : > { %v458_v56 = vpop.xlane.xlu1 %457 }
 0x213   : > { %v467_v5 = vpop.xlane.xlu0 %466 }
 0x215   : > { %v464_v61 = vpop.xlane.xlu1 %463 }
 0x217   : > { %v470_v21 = vpop.xlane.xlu0 %469 }
 0x218   : > { %v1109_v59 = vpop.eup %1108 }
 0x219   : > { %v480_v60 = vrot.slane %v1109_v59, %v1471_v55  ;;  %v484_v63 = vrot.slane %v1109_v59, %v483_v58  ;;  %v461_v20 = vpop.xlane.xlu1 %460 }
 0x21b   : > { %v488_v62 = vmul.f32 %v480_v60, %v455_v57  ;;  %v487_v0 = vmul.f32 %v480_v60, %v452_v53  ;;  %v489_v6 = vmul.f32 %v480_v60, %v458_v56  ;;  %v491_v19 = vmul.f32 %v484_v63, %v464_v61  ;;  %v473_v29 = vpop.xlane.xlu0 %472 }
 0x21c   : > { %v490_v22 = vmul.f32 %v480_v60, %v461_v20  ;;  %v492_v23 = vmul.f32 %v484_v63, %v467_v5  ;;  %v493_v25 = vmul.f32 %v484_v63, %v470_v21  ;;  %v494_v30 = vmul.f32 %v484_v63, %v473_v29 }
 0x21d   : > { %513 = vperm.xlu0 %1096, %v488_v62   ;;  %510 = vperm.xlu1 %1097, %v487_v0  }
 0x221   : > { %516 = vperm.xlu0 %1096, %v489_v6   ;;  %522 = vperm.xlu1 %1097, %v491_v19   ;;  %v990_v19 = vld [vmem:[%s1638_s4] ss:$0 sm:$0xff] }
 0x225   : > { %519 = vperm.xlu0 %1096, %v490_v22   ;;  %525 = vperm.xlu1 %1097, %v492_v23  }
 0x229   : > { %528 = vperm.xlu1 %1097, %v493_v25  }
 0x22d   : > { %531 = vperm.xlu1 %1097, %v494_v30  }
 0x29c   : > { %v514_v33 = vpop.permute.xlu0 %513  ;;  %v511_v34 = vpop.permute.xlu1 %510 }
 0x29d   : > { %v543_v48 = vrot.slane %v514_v33, %v542_v42  ;;  %v538_v49 = vrot.slane %v511_v34, %v537_v43  ;;  %v684_v33 = vld [vmem:[%s1639_s5] sm:$0xff]  ;;  %v685_v34 = vld [vmem:[%s1639_s5 + $0x8] sm:$0xff] }
 0x29f   : > { %v545_v59 = vsel %vm544_vm4, %v543_v48, %v538_v49 }
 0x2a0   : > { %v523_v36 = vpop.permute.xlu1 %522  ;;  %v517_v39 = vpop.permute.xlu0 %516 }
 0x2a1   : > { %v550_v51 = vrot.slane %v517_v39, %v549_v44  ;;  %v563_v53 = vrot.slane %v523_v36, %v537_v43  ;;  %v1034_v36 = vpack.c.bf16 %v685_v34, %v684_v33  ;;  %v1038_v39 = vpack.c.bf16 %v687_v38, %v686_v37 }
 0x2a3   : > { %v552_v62 = vsel %vm551_vm5, %v550_v51, %v545_v59  ;;  %1036 = vmatpush3.bf16.xpose.msk.msra.mxu1 %vm1035_vm9, %v1034_v36 }
 0x2a4   : > { %v526_v41 = vpop.permute.xlu1 %525  ;;  %v520_v46 = vpop.permute.xlu0 %519  ;;  %1037 = vmatprep.subr.bf16.mxu1 %v1216_v35 }
 0x2a5   : > { %v567_v50 = vrot.slane %v526_v41, %v542_v42  ;;  %v557_v56 = vrot.slane %v520_v46, %v556_v45  ;;  %v994_v46 = vld [vmem:[%s1638_s4 + $0x2] ss:$0 sm:$0xff] }
 0x2a7   : > { %v568_v60 = vsel %vm544_vm4, %v567_v50, %v563_v53  ;;  %v559_v0 = vsel %vm558_vm6, %v557_v56, %v552_v62  ;;  %v1217_v50 = vmov 1  }
 0x2a8   : > { %v529_v47 = vpop.permute.xlu1 %528  ;;  %1099 = vset.pattern.permute.xlu1 %v1217_v50  ;;  %1098 = vset.pattern.permute.xlu0 %v1217_v50 }
 0x2a9   : > { %v572_v52 = vrot.slane %v529_v47, %v549_v44  ;;  %v993_v44 = vld [vmem:[%s1638_s4 + $0x1] ss:$0 sm:$0xff] }
 0x2ab   : > { %v573_v63 = vsel %vm551_vm5, %v572_v52, %v568_v60  ;;  %1040 = vmatpush3.bf16.xpose.msk.msra.mxu1 %vm1035_vm9, %v1038_v39 }
 0x2ac   : > { %v532_v57 = vpop.permute.xlu1 %531 }
 0x2ad   : > { %v577_v61 = vrot.slane %v532_v57, %v556_v45 }
 0x2af   : > { %v578_v5 = vsel %vm558_vm6, %v577_v61, %v573_v63 }
 0x2b0   : > { %v579_v6 = vsel %vm376_vm0, %v578_v5, %v559_v0 }
 0x2b1   : > { %1020 = vmatmul.mubr.msk.f32.vlgmr.msra.gmra.mrb[0].mxu0 %vm580_vm2, %v579_v6 }
 0x384   : > { %v652_v20 = vpop.f32.mrb[0].mxu0 }
 0x385   : > { %v653_v21 = vadd.f32 %v990_v19, %v652_v20  ;;  %v1021_v22 = vpop.f32.mrb[1].mxu0 }
 0x387   : > { %v657_v23 = vsel %vm656_vm7, %v653_v21, 0.0 }
 0x388   : > { %658 = vadd.xlane.f32.xlu0 %v657_v23 }
 0x415   : > { %v659_v25 = vpop.xlane.xlu0 %658 }
 0x416   : > { %v661_v29 = vmul.f32 0.25, %v659_v25 }
 0x418   : > { %v662_v30 = vsub.f32 %v653_v21, %v661_v29 }
 0x41a   : > { %v663_v31 = vmul.f32 %v662_v30, %v662_v30 }
 0x41c   : > { %v664_v32 = vsel %vm656_vm7, %v663_v31, 0.0 }
 0x41d   : > { %665 = vadd.xlane.f32.xlu1 %v664_v32 }
 0x4aa   : > { %v666_v40 = vpop.xlane.xlu1 %665 }
 0x4ab   : > { %v667_v41 = vmul.f32 0.25, %v666_v40 }
 0x4ad   : > { %v668_v42 = vadd.f32 1e-05, %v667_v41 }
 0x4af   : > { %1110 = vrsqrt.f32 %v668_v42 }
 0x4b9   : > { %v1111_v43 = vpop.eup %1110 }
 0x4ba   : > { %v670_v45 = vmul.f32 %v1111_v43, %v662_v30 }
 0x4bc   : > { %v676_v47 = vmul.f32 %v993_v44, %v670_v45 }
 0x4be   : > { %v682_v48 = vadd.f32 %v994_v46, %v676_v47 }
 0x4c0   : > { %v683_v49 = vmax.f32 %v682_v48, 0.0 }
 0x4c2   : > { %1031 = vmatmul.mubr.msk.f32.vlgmr.msra.gmra.mrb[0].mxu1 %vm688_vm8, %v683_v49 }
 0x595   : > { %v770_v51 = vpop.f32.mrb[0].mxu1 }
 0x596   : > { %v777_v52 = vrot.slane %v770_v51, %v1471_v55  ;;  %v1032_v53 = vpop.f32.mrb[1].mxu1  ;;  %v796_v56 = vrot.slane %v770_v51, %v483_v58 }
 0x598   : > { %783 = vbcast.lane.b32.xlu1 %v777_v52, 264  ;;  %779 = vbcast.lane.b32.xlu0 %v777_v52, 256 }
 0x59c   : > { %791 = vbcast.lane.b32.xlu1 %v777_v52, 280  ;;  %787 = vbcast.lane.b32.xlu0 %v777_v52, 272 }
 0x5a0   : > { %802 = vbcast.lane.b32.xlu1 %v796_v56, 264  ;;  %798 = vbcast.lane.b32.xlu0 %v796_v56, 256 }
 0x5a4   : > { %810 = vbcast.lane.b32.xlu1 %v796_v56, 280  ;;  %806 = vbcast.lane.b32.xlu0 %v796_v56, 272 }
 0x60a   : > { %v784_v57 = vpop.permute.xlu1 %783  ;;  %v780_v59 = vpop.permute.xlu0 %779 }
 0x60b   : > { %v813_v60 = vadd.f32 %v784_v57, %v1395_v4  ;;  %v812_v61 = vadd.f32 %v780_v59, %v1383_v2 }
 0x60d   : > { %827 = vperm.xlu1 %1099, %v813_v60   ;;  %822 = vperm.xlu0 %1098, %v812_v61  }
 0x60e   : > { %v792_v55 = vpop.permute.xlu1 %791  ;;  %v788_v62 = vpop.permute.xlu0 %787 }
 0x60f   : > { %v815_v63 = vadd.f32 %v792_v55, %v1390_v3  ;;  %v814_v0 = vadd.f32 %v788_v62, %v1378_v1 }
 0x611   : > { %837 = vperm.xlu0 %1098, %v815_v63   ;;  %832 = vperm.xlu1 %1099, %v814_v0  }
 0x612   : > { %v803_v54 = vpop.permute.xlu1 %802  ;;  %v799_v58 = vpop.permute.xlu0 %798 }
 0x613   : > { %v817_v5 = vadd.f32 %v803_v54, %v1395_v4  ;;  %v816_v6 = vadd.f32 %v799_v58, %v1383_v2 }
 0x615   : > { %847 = vperm.xlu0 %1098, %v817_v5   ;;  %842 = vperm.xlu1 %1099, %v816_v6  }
 0x616   : > { %v811_v19 = vpop.permute.xlu1 %810  ;;  %v807_v20 = vpop.permute.xlu0 %806 }
 0x617   : > { %v819_v21 = vadd.f32 %v811_v19, %v1390_v3  ;;  %v818_v22 = vadd.f32 %v807_v20, %v1378_v1 }
 0x619   : > { %857 = vperm.xlu0 %1098, %v819_v21   ;;  %852 = vperm.xlu1 %1099, %v818_v22  }
 0x68c   : > { %v828_v23 = vpop.permute.xlu1 %827  ;;  %v823_v25 = vpop.permute.xlu0 %822 }
 0x68d   : > { %v862_v29 = vadd.f32 %v828_v23, %v1415_v12  ;;  %v863_v30 = vadd.f32 %v828_v23, %v1418_v13  ;;  %v860_v4 = vadd.f32 %v823_v25, %v1400_v7  ;;  %v861_v2 = vadd.f32 %v823_v25, %v1403_v8 }
 0x68f   : > { %878 = vst [vmem:[%s1553_s22 + $0x10] sm:$0xff] %v862_v29  ;;  %879 = vst [vmem:[%s1553_s22 + $0x18] sm:$0xff] %v863_v30 }
 0x690   : > { %876 = vst [vmem:[%s1553_s22] sm:$0xff] %v860_v4  ;;  %877 = vst [vmem:[%s1553_s22 + $0x8] sm:$0xff] %v861_v2  ;;  %v833_v1 = vpop.permute.xlu1 %832  ;;  %v838_v3 = vpop.permute.xlu0 %837 }
 0x691   : > { %v864_v7 = vadd.f32 %v833_v1, %v1406_v9  ;;  %v865_v8 = vadd.f32 %v833_v1, %v1427_v16  ;;  %v866_v12 = vadd.f32 %v838_v3, %v1440_v24  ;;  %v867_v13 = vadd.f32 %v838_v3, %v1443_v26 }
 0x693   : > { %880 = vst [vmem:[%s1553_s22 + $0x20] sm:$0xff] %v864_v7  ;;  %881 = vst [vmem:[%s1553_s22 + $0x28] sm:$0xff] %v865_v8 }
 0x694   : > { %882 = vst [vmem:[%s1553_s22 + $0x30] sm:$0xff] %v866_v12  ;;  %883 = vst [vmem:[%s1553_s22 + $0x38] sm:$0xff] %v867_v13  ;;  %v843_v31 = vpop.permute.xlu1 %842  ;;  %v848_v32 = vpop.permute.xlu0 %847 }
 0x695   : > { %v868_v33 = vadd.f32 %v843_v31, %v1409_v10  ;;  %v869_v9 = vadd.f32 %v843_v31, %v1412_v11  ;;  %v870_v34 = vadd.f32 %v848_v32, %v1421_v14  ;;  %v871_v16 = vadd.f32 %v848_v32, %v1424_v15 }
 0x697   : > { %884 = vst [vmem:[%s1553_s22 + $0x40] sm:$0xff] %v868_v33  ;;  %885 = vst [vmem:[%s1553_s22 + $0x48] sm:$0xff] %v869_v9 }
 0x698   : > { %886 = vst [vmem:[%s1553_s22 + $0x50] sm:$0xff] %v870_v34  ;;  %887 = vst [vmem:[%s1553_s22 + $0x58] sm:$0xff] %v871_v16  ;;  %v853_v24 = vpop.permute.xlu1 %852  ;;  %v858_v10 = vpop.permute.xlu0 %857 }
 0x699   : > { %v872_v11 = vadd.f32 %v853_v24, %v1430_v17  ;;  %v873_v14 = vadd.f32 %v853_v24, %v1433_v18  ;;  %v874_v15 = vadd.f32 %v858_v10, %v1446_v27  ;;  %v875_v26 = vadd.f32 %v858_v10, %v1449_v28 }
 0x69b   : > { %888 = vst [vmem:[%s1553_s22 + $0x60] sm:$0xff] %v872_v11  ;;  %889 = vst [vmem:[%s1553_s22 + $0x68] sm:$0xff] %v873_v14 }
 0x69c   : > { %890 = vst [vmem:[%s1553_s22 + $0x70] sm:$0xff] %v874_v15  ;;  %891 = vst [vmem:[%s1553_s22 + $0x78] sm:$0xff] %v875_v26 }
 0x69d   : > { %1155 = shalt.err (!%p1152_p2)
}
 0x69e   : > { %s1156_s12 = scalar_lea.hbm %s1580_s19, 2048  ;;  %s1160_s16 = scalar_lea.hbm %s1640_s6, 4096 }
 0x69f   : > { %p1157_p4 = scmp.ne.s32.totalorder %s1580_s19, %s1156_s12  ;;  %p1161_p9 = scmp.lt.u32.totalorder %s1580_s19, %s1640_s6 }
 0x6a0   : > { %p1162_p1 = scmp.lt.u32.totalorder %s1160_s16, %s1156_s12  ;;  %p1164_p6 = scmp.lt.u32.totalorder %s1156_s12, %s1580_s19 }
 0x6a1   : > { %p1158_p5 = pnand %p1157_p4, %p1647_p11 }
 0x6a2   : > { %p1163_p3 = por %p1162_p1, %p1161_p9 }
 0x6a3   : > { %p1159_p7 = pneg %p1158_p5 }
 0x6a4   : > { %p1165_p12 = por %p1164_p6, %p1163_p3 }
 0x6a6   : > { %p1166_p13 = pnand %p1165_p12, %p1159_p7 }
 0x6a8   : > { %1169 = shalt.err (!%p1166_p13)
}
 0x6a9   : > { %s1219_s29 = smov 256   ;;  %s1220_s8 = smov 16  }
 0x6aa   : > { %1043 = dma.vmem_to_hbm [thread:$0]  (%p1647_p11), %s1582_s30, 2048, %s1580_s19, %s893_s2, %s1219_s29, %s1219_s29, %s1220_s8  }
 0x6ab PF: > { %s922_s17 = sand.u32 1, %s1196_s23   ;;  %p1648_p8 = scmp.ne.s32.totalorder %s1645_s11, 0 }
 0x6ac   : > { %p1649_p10 = scmp.ge.s32.totalorder %s1208_s26, 2  ;;  %s923_s20 = scalar_lea.sflag [#allocation5], %s922_s17 }
 0x6ae   : > { %p1050_p0 = pnand %p1649_p10, %p1648_p8 }
 0x6b0   : > { %1191 = dma.done.wait (!%p1050_p0), %s923_s20, 2048  }
 0x6b1   : > { %1193 = vsyncadd (!%p1050_p0), %s923_s20, 4294965248  ;;  %p20_p2 = scmp.ge.s32.totalorder %s1284_s28, 4   ;;  %s1650_s23 = smov %s1200_s24 }
 0x6b2   : > { %s1651_s24 = smov %s1204_s25  ;;  %s1652_s25 = smov %s1296_s7 }
 0x6b3   : > { %s1653_s26 = smov %s1284_s28  ;;  %22 = sbr.rel (!%p20_p2) target bundleno = 7 (0x7), region = 89 }
 0x6ba   :  { %928 = vsyncpa [#allocation4], 1 }
 0x6bb   :  { %930 = vsyncpa [#allocation4 + $0x1], 1 }
 0x6bc   :  { %931 = vsyncpa [#allocation5], 1 }
 0x6bd   :  { %933 = vsyncpa [#allocation5 + $0x1], 1 }

</bundles_post_ra>
